<compile_context>
chip_gen: v5e
topology: v5e:2x2
jax: 0.10.0
libtpu: 0.0.40
codegen_flags: <defaults>
</compile_context>

<pallas_src>
import functools

import jax
import jax.numpy as jnp
from jax.experimental import pallas as pl
from jax.experimental.pallas import tpu as pltpu

F32 = jnp.float32
_INV_SQRT_ATT = 1.0 / (32.0 ** 0.5)   # attention_dim = 32

# ---- row offsets inside the packed (56, 128) f32 parameter slab --------------------
_ROW_W_A1 = 0     # (3, 16)   application GCN layer-1 weight
_ROW_B_A1 = 3     # (1, 16)
_ROW_B_A2 = 4     # (1, 3)
_ROW_B_OV = 5     # (1, 2)    [b_po, b_v]
_ROW_W_O2 = 6     # (1, 32)   w_po2^T (policy query->score projection)
_ROW_W_OV = 7     # (1, 128)  [w_po1^T | w_v^T]
_ROW_W_A2T = 8    # (3, 16)   w_a2^T  (application GCN layer-2 weight, transposed)
_ROW_B_K = 11     # (1, 64)   [b_pk | b_ck]
_ROW_W_PC1 = 12   # (4, 128)  [w_p1 | w_c1]  fused infra layer-1
_ROW_B_PC1 = 16   # (1, 128)  [b_p1 | b_c1]
_ROW_W_QE = 17    # (3, 64)   [w_pq_e | w_cq_e] fused query (embedding part)
_ROW_W_QR = 20    # (1, 64)   [w_pq_r | w_cq_r] fused query (requests_left part)
_ROW_B_Q = 21     # (1, 64)   [b_pq | b_cq]
_ROW_W_KT = 24    # (32, 128) [w_pk^T (lanes 0:64) | w_ck^T (lanes 64:128)]
_SLAB_ROWS = 56   # multiple of 8 sublanes, ~28 KiB

# ---- lane offsets inside the packed (8, 128) f32 state slab ------------------------
_COL_A_APP = 0    # (Na, Na)
_COL_X_APP = 32   # (Na, 3)
_COL_A_INF = 64   # (Nn, Nn)
_COL_X_INF = 96   # (Nn, 4)
_COL_REQ = 120    # (1, 1) requests_left

# ---- lane offsets inside the packed (1, 128) f32 output slab -----------------------
_OUT_PROBS = 0    # (1, Nn)  exact softmax(scores)
_OUT_SCORES = 32  # (1, Nn)  node_scores
_OUT_VALUE = 64   # (1, 1)   state value
_OUT_LSE = 65     # (1, 1)   logsumexp(scores)


def _relu(x):
    return jnp.maximum(x, 0.0)


def _softmax_lanes_approx(x):
    """Internal attention softmax over lanes; reciprocal goes to the EUP slot."""
    m = jnp.max(x, axis=-1, keepdims=True)
    e = jnp.exp(x - m)
    return e * pl.reciprocal(jnp.sum(e, axis=-1, keepdims=True), approx=True)


def _dot(a, b):
    return jnp.dot(a, b, preferred_element_type=F32)


# a @ b.T without materializing the transpose (same dim-numbers the TPU flash kernels use).
_TRANS_B = (((1,), (1,)), ((), ()))


def _dot_bt(a, b):
    return jax.lax.dot_general(a, b, _TRANS_B, preferred_element_type=F32)


def actor_critic_kernel(s_ref, p_ref, out_ref, *, na, nn):
    # ---------- unpack the single state slab (one DMA) ----------
    a_app = s_ref[0:na, _COL_A_APP:_COL_A_APP + na]          # (Na, Na) normalized adjacency
    x_app = s_ref[0:na, _COL_X_APP:_COL_X_APP + 3]           # (Na, 3)
    a_inf = s_ref[0:nn, _COL_A_INF:_COL_A_INF + nn]          # (Nn, Nn)
    x_inf = s_ref[0:nn, _COL_X_INF:_COL_X_INF + 4]           # (Nn, 4)
    r = s_ref[0:1, _COL_REQ:_COL_REQ + 1]                    # (1, 1) requests_left

    # ---------- GNNApplication: layer-1 per node, mean-pool folded through layer-2 ----------
    ax = _dot(a_app, x_app)                                               # (Na, 3)
    h = _relu(_dot(ax, p_ref[_ROW_W_A1:_ROW_W_A1 + 3, 0:16])
              + p_ref[_ROW_B_A1:_ROW_B_A1 + 1, 0:16])                     # (Na, 16)
    pool_a = jnp.sum(a_app, axis=0, keepdims=True) * (1.0 / na)           # (1, Na) mean of rows
    pooled_h = _dot(pool_a, h)                                            # (1, 16)
    req_emb = (_dot_bt(pooled_h, p_ref[_ROW_W_A2T:_ROW_W_A2T + 3, 0:16])
               + p_ref[_ROW_B_A2:_ROW_B_A2 + 1, 0:3])                     # (1, 3)

    # ---------- shared infra aggregation + fused policy|critic layer 1 ----------
    ax_inf = _dot(a_inf, x_inf)                                           # (Nn, 4) computed ONCE
    h_all = _relu(_dot(ax_inf, p_ref[_ROW_W_PC1:_ROW_W_PC1 + 4, :])
                  + p_ref[_ROW_B_PC1:_ROW_B_PC1 + 1, :])                  # (Nn, 128) = [hn | hc]

    # ---------- fused query: [req_emb, requests_left] (policy lanes 0:32, critic 32:64) ----------
    q_all = (_dot(req_emb, p_ref[_ROW_W_QE:_ROW_W_QE + 3, 0:64])
             + r * p_ref[_ROW_W_QR:_ROW_W_QR + 1, 0:64]
             + p_ref[_ROW_B_Q:_ROW_B_Q + 1, 0:64])                        # (1, 64)

    # ---------- re-associated attention scores: s = (q·Wk^T)·h^T + q·bk ----------
    w_kt = p_ref[_ROW_W_KT:_ROW_W_KT + 32, :]                             # (32, 128)
    t_p = _dot(q_all[:, 0:32], w_kt[:, 0:64])                             # (1, 64)
    t_c = _dot(q_all[:, 32:64], w_kt[:, 64:128])                          # (1, 64)
    b_k = p_ref[_ROW_B_K:_ROW_B_K + 1, 0:64]                              # (1, 64)
    c_bk_p = jnp.sum(q_all[:, 0:32] * b_k[:, 0:32], axis=-1, keepdims=True)    # VPU + lane reduce
    c_bk_c = jnp.sum(q_all[:, 32:64] * b_k[:, 32:64], axis=-1, keepdims=True)
    s_p = (_dot_bt(t_p, h_all[:, 0:64]) + c_bk_p) * _INV_SQRT_ATT         # (1, Nn)
    s_c = (_dot_bt(t_c, h_all[:, 64:128]) + c_bk_c) * _INV_SQRT_ATT       # (1, Nn)

    # ---------- output projections with the node axis on LANES ----------
    w_ov = p_ref[_ROW_W_OV:_ROW_W_OV + 1, :]                              # (1, 128) [w_po1^T | w_v^T]
    o1 = _dot_bt(w_ov[:, 0:64], h_all[:, 0:64])                           # (1, Nn)  == (hn @ w_po1)^T
    vpr = _dot_bt(w_ov[:, 64:128], h_all[:, 64:128])                      # (1, Nn)  == (hc @ w_v)^T

    att_p = _softmax_lanes_approx(s_p)                                    # (1, Nn)
    att_c = _softmax_lanes_approx(s_c)                                    # (1, Nn)

    b_ov = p_ref[_ROW_B_OV:_ROW_B_OV + 1, 0:2]                            # (1, 2) [b_po, b_v]
    # policy query->score term: (1x32)@(32x1) matmul replaced by VPU mul + lane reduce
    c_p = (jnp.sum(q_all[:, 0:32] * p_ref[_ROW_W_O2:_ROW_W_O2 + 1, 0:32],
                   axis=-1, keepdims=True) + b_ov[:, 0:1])                # (1, 1)

    scores = att_p * o1 + c_p                                             # (1, Nn)

    # torch.softmax(node_scores, dim=0): EXACT denominator for the emitted probs,
    # plus logsumexp(scores) so act() never re-reduces.
    m = jnp.max(scores, axis=-1, keepdims=True)
    e = jnp.exp(scores - m)
    se = jnp.sum(e, axis=-1, keepdims=True)
    probs = e / se                                                        # (1, Nn)
    lse = m + jnp.log(se)                                                 # (1, 1)

    # critic: attention-pooled value; (1x64)@(64x1) replaced by lane reduce
    value = jnp.sum(att_c * vpr, axis=-1, keepdims=True) + b_ov[:, 1:2]   # (1, 1)

    # ---------- single lane-dense (1, 128) output row -> ONE writeback DMA ----------
    out_ref[...] = jnp.zeros_like(out_ref)
    out_ref[0:1, _OUT_PROBS:_OUT_PROBS + nn] = probs
    out_ref[0:1, _OUT_SCORES:_OUT_SCORES + nn] = scores
    out_ref[0:1, _OUT_VALUE:_OUT_VALUE + 1] = value
    out_ref[0:1, _OUT_LSE:_OUT_LSE + 1] = lse


def pack_params(params):
    """Packs all weights/biases into one lane-dense (56, 128) f32 slab (host-side, static)."""
    slab = jnp.zeros((_SLAB_ROWS, 128), dtype=F32)

    def put(s, row, col, arr):
        arr = jnp.asarray(arr, dtype=F32)
        return s.at[row:row + arr.shape[0], col:col + arr.shape[1]].set(arr)

    slab = put(slab, _ROW_W_A1, 0, params["w_a1"])
    slab = put(slab, _ROW_B_A1, 0, params["b_a1"])
    slab = put(slab, _ROW_B_A2, 0, params["b_a2"])
    slab = put(slab, _ROW_B_OV, 0, jnp.concatenate([params["b_po"], params["b_v"]], axis=1))
    slab = put(slab, _ROW_W_O2, 0, params["w_po2"].T)
    slab = put(slab, _ROW_W_OV, 0, jnp.concatenate([params["w_po1"].T, params["w_v"].T], axis=1))
    slab = put(slab, _ROW_W_A2T, 0, params["w_a2"].T)
    slab = put(slab, _ROW_B_K, 0, jnp.concatenate([params["b_pk"], params["b_ck"]], axis=1))
    slab = put(slab, _ROW_W_PC1, 0, jnp.concatenate([params["w_p1"], params["w_c1"]], axis=1))
    slab = put(slab, _ROW_B_PC1, 0, jnp.concatenate([params["b_p1"], params["b_c1"]], axis=1))
    slab = put(slab, _ROW_W_QE, 0, jnp.concatenate([params["w_pq_e"], params["w_cq_e"]], axis=1))
    slab = put(slab, _ROW_W_QR, 0, jnp.concatenate([params["w_pq_r"], params["w_cq_r"]], axis=1))
    slab = put(slab, _ROW_B_Q, 0, jnp.concatenate([params["b_pq"], params["b_cq"]], axis=1))
    slab = put(slab, _ROW_W_KT, 0, params["w_pk"].T)     # (32, 64), lanes 0:64
    slab = put(slab, _ROW_W_KT, 64, params["w_ck"].T)    # (32, 64), lanes 64:128
    return slab


def pack_state(x_app, a_app, x_inf, a_inf, requests_left):
    """Packs the preprocessed graph state + requests_left into one (rows, 128) f32 slab."""
    na, nn = x_app.shape[0], x_inf.shape[0]
    assert na <= 32 and nn <= 24, "state slab lane layout assumes Na<=32, Nn<=24"
    rows = ((max(na, nn) + 7) // 8) * 8
    slab = jnp.zeros((rows, 128), dtype=F32)
    slab = slab.at[0:na, _COL_A_APP:_COL_A_APP + na].set(a_app.astype(F32))
    slab = slab.at[0:na, _COL_X_APP:_COL_X_APP + x_app.shape[1]].set(x_app.astype(F32))
    slab = slab.at[0:nn, _COL_A_INF:_COL_A_INF + nn].set(a_inf.astype(F32))
    slab = slab.at[0:nn, _COL_X_INF:_COL_X_INF + x_inf.shape[1]].set(x_inf.astype(F32))
    slab = slab.at[0:1, _COL_REQ:_COL_REQ + 1].set(jnp.reshape(requests_left, (1, 1)).astype(F32))
    return slab


def run_actor_critic(params_slab, state_slab, num_app_nodes, num_nodes):
    """Runs the fused policy+critic Pallas kernel. Returns one (1, 128) output row."""
    vmem = pl.BlockSpec(memory_space=pltpu.MemorySpace.VMEM)
    kernel = functools.partial(actor_critic_kernel, na=num_app_nodes, nn=num_nodes)
    return pl.pallas_call(
        kernel,
        out_shape=jax.ShapeDtypeStruct((1, 128), F32),
        in_specs=[vmem, vmem],
        out_specs=vmem,
    )(state_slab, params_slab)


def act(params_slab, state, key, action_mask=None):
    """Mirrors ActorCriticWorker.act() (inference=False, messages=False)."""
    na = state["x_app"].shape[0]
    nn = state["x_inf"].shape[0]
    state_slab = pack_state(state["x_app"], state["a_app"],
                            state["x_inf"], state["a_inf"],
                            state["requests_left"])
    out = run_actor_critic(params_slab, state_slab, na, nn)
    probs = out[0, _OUT_PROBS:_OUT_PROBS + nn]
    scores = out[0, _OUT_SCORES:_OUT_SCORES + nn]
    state_val = out[0, _OUT_VALUE]
    lse = out[0, _OUT_LSE]

    if action_mask is None:
        # Categorical over softmax(scores): sample directly from the logits (shift-invariant)
        # and use the kernel-emitted logsumexp for the exact log-prob.
        action = jax.random.categorical(key, scores)
        action_logprob = scores[action] - lse
    else:
        masked = probs * action_mask
        masked = jnp.where(jnp.sum(masked) > 0.0, masked, jnp.ones_like(masked))
        probs = masked / jnp.sum(masked)
        logits = jnp.log(probs)
        action = jax.random.categorical(key, logits)
        action_logprob = logits[action] - jax.nn.logsumexp(logits)
    return action, action_logprob, state_val, probs, scores


def normalize_adj(a):
    """Symmetric GCN normalization D^{-1/2}(A+I)D^{-1/2} (plain-JAX glue)."""
    a = a + jnp.eye(a.shape[0], dtype=F32)
    d = jnp.sum(a, axis=1)
    dinv = 1.0 / jnp.sqrt(d)
    return a * dinv[:, None] * dinv[None, :]


def init_params(key):
    """Deterministic synthetic parameters with shapes implied by the module's __init__."""
    ks = jax.random.split(key, 16)

    def w(k, shape, scale=0.1):
        return (jax.random.normal(k, shape, dtype=F32) * scale).astype(F32)

    def b(shape):
        return jnp.zeros(shape, dtype=F32)

    hid_app, emb_app = 16, 3              # GNNApplication(3, 16, 3)
    in_inf, hid, emb, att = 4, 64, 4, 32  # GNN{Attention,Critic}(4, 64, emb=3+1, att=32, out=1)
    return {
        # application GNN
        "w_a1": w(ks[0], (3, hid_app)), "b_a1": b((1, hid_app)),
        "w_a2": w(ks[1], (hid_app, emb_app)), "b_a2": b((1, emb_app)),
        # policy GNN
        "w_p1": w(ks[2], (in_inf, hid)), "b_p1": b((1, hid)),
        "w_pq_e": w(ks[3], (emb - 1, att)), "w_pq_r": w(ks[4], (1, att)), "b_pq": b((1, att)),
        "w_pk": w(ks[5], (hid, att)), "b_pk": b((1, att)),
        "w_po1": w(ks[6], (hid, 1)), "w_po2": w(ks[7], (att, 1)), "b_po": b((1, 1)),
        # critic GNN
        "w_c1": w(ks[8], (in_inf, hid)), "b_c1": b((1, hid)),
        "w_cq_e": w(ks[9], (emb - 1, att)), "w_cq_r": w(ks[10], (1, att)), "b_cq": b((1, att)),
        "w_ck": w(ks[11], (hid, att)), "b_ck": b((1, att)),
        "w_v": w(ks[12], (hid, 1)), "b_v": b((1, 1)),
    }


if __name__ == "__main__":
    key = jax.random.PRNGKey(0)
    k_param, k_app, k_inf, k_adj, k_sample = jax.random.split(key, 5)

    num_app_nodes = 8    # tasks in the application/request DAG
    num_nodes = 8        # infrastructure nodes == action_dims
    params = init_params(k_param)
    params_slab = pack_params(params)   # single lane-dense (56, 128) parameter slab

    # Application graph: a simple chain DAG with 3 features per task node.
    x_app = jax.random.uniform(k_app, (num_app_nodes, 3), dtype=F32)
    a_app_raw = jnp.eye(num_app_nodes, k=1, dtype=F32) + jnp.eye(num_app_nodes, k=-1, dtype=F32)
    a_app = normalize_adj(a_app_raw)

    # Infrastructure graph: 4 features per node (cpu, cost, device_coef, allocation flag).
    x_inf = jax.random.uniform(k_inf, (num_nodes, 4), dtype=F32)
    a_inf_raw = (jax.random.uniform(k_adj, (num_nodes, num_nodes), dtype=F32) > 0.5).astype(F32)
    a_inf_raw = jnp.maximum(a_inf_raw, a_inf_raw.T)  # symmetric latency graph
    a_inf = normalize_adj(a_inf_raw)

    requests_left = jnp.full((1, 1), 5.0, dtype=F32)

    state = {
        "x_app": x_app, "a_app": a_app,
        "x_inf": x_inf, "a_inf": a_inf,
        "requests_left": requests_left,
    }

    action, logprob, state_val, probs, scores = act(params_slab, state, k_sample)
    jax.block_until_ready((action, logprob, state_val, probs, scores))

    assert probs.shape == (num_nodes,)
    assert abs(float(jnp.sum(probs)) - 1.0) < 1e-3   # exact softmax denominator now
    assert scores.shape == (num_nodes,)
    assert bool(jnp.isfinite(logprob)) and bool(jnp.isfinite(state_val))
    assert float(logprob) <= 0.0
    print("KERNEL_OK")
</pallas_src>

<mosaic_0001>
module attributes {stable_mosaic.version = 11 : i64} {
  func.func @actor_critic_kernel(%arg0: memref<8x128xf32, #tpu.memory_space<vmem>>, %arg1: memref<56x128xf32, #tpu.memory_space<vmem>>, %arg2: memref<1x128xf32, #tpu.memory_space<vmem>>) attributes {dimension_semantics = [], scalar_prefetch = 0 : i64, scratch_operands = 0 : i64, tpu.core_type = #tpu.core_type<tc>} {
    %c0 = arith.constant 0 : index
    %c0_0 = arith.constant 0 : index
    %0 = vector.load %arg0[%c0, %c0_0] : memref<8x128xf32, #tpu.memory_space<vmem>>, vector<8x8xf32>
    %c0_1 = arith.constant 0 : index
    %c32 = arith.constant 32 : index
    %1 = vector.load %arg0[%c0_1, %c32] : memref<8x128xf32, #tpu.memory_space<vmem>>, vector<8x3xf32>
    %c0_2 = arith.constant 0 : index
    %c64 = arith.constant 64 : index
    %2 = vector.load %arg0[%c0_2, %c64] : memref<8x128xf32, #tpu.memory_space<vmem>>, vector<8x8xf32>
    %c0_3 = arith.constant 0 : index
    %c96 = arith.constant 96 : index
    %3 = vector.load %arg0[%c0_3, %c96] : memref<8x128xf32, #tpu.memory_space<vmem>>, vector<8x4xf32>
    %c0_4 = arith.constant 0 : index
    %c120 = arith.constant 120 : index
    %4 = vector.load %arg0[%c0_4, %c120] : memref<8x128xf32, #tpu.memory_space<vmem>>, vector<1x1xf32>
    %cst = arith.constant dense<0.000000e+00> : vector<8x3xf32>
    %5 = tpu.matmul %0, %1, %cst {dimension_numbers = #tpu.dot_dimension_numbers<[1], [0], [0], [1], [0, 0, 1, 1], [], []>} : vector<8x8xf32>, vector<8x3xf32>, vector<8x3xf32> -> vector<8x3xf32>
    %c0_5 = arith.constant 0 : index
    %c0_6 = arith.constant 0 : index
    %6 = vector.load %arg1[%c0_5, %c0_6] : memref<56x128xf32, #tpu.memory_space<vmem>>, vector<3x16xf32>
    %cst_7 = arith.constant dense<0.000000e+00> : vector<8x16xf32>
    %7 = tpu.matmul %5, %6, %cst_7 {dimension_numbers = #tpu.dot_dimension_numbers<[1], [0], [0], [1], [0, 0, 1, 1], [], []>} : vector<8x3xf32>, vector<3x16xf32>, vector<8x16xf32> -> vector<8x16xf32>
    %c3 = arith.constant 3 : index
    %c0_8 = arith.constant 0 : index
    %8 = vector.load %arg1[%c3, %c0_8] : memref<56x128xf32, #tpu.memory_space<vmem>>, vector<1x16xf32>
    %9 = vector.broadcast %8 : vector<1x16xf32> to vector<8x16xf32>
    %10 = arith.addf %7, %9 : vector<8x16xf32>
    %cst_9 = arith.constant 0.000000e+00 : f32
    %11 = vector.broadcast %cst_9 : f32 to vector<8x16xf32>
    %12 = arith.maximumf %10, %11 : vector<8x16xf32>
    %cst_10 = arith.constant dense<0.000000e+00> : vector<8xf32>
    %13 = vector.multi_reduction <add>, %0, %cst_10 [0] : vector<8x8xf32> to vector<8xf32>
    %14 = vector.shape_cast %13 : vector<8xf32> to vector<1x8xf32>
    %cst_11 = arith.constant 1.250000e-01 : f32
    %15 = vector.broadcast %cst_11 : f32 to vector<1x8xf32>
    %16 = arith.mulf %14, %15 : vector<1x8xf32>
    %cst_12 = arith.constant dense<0.000000e+00> : vector<1x16xf32>
    %17 = tpu.matmul %16, %12, %cst_12 {dimension_numbers = #tpu.dot_dimension_numbers<[1], [0], [0], [1], [0, 0, 1, 1], [], []>} : vector<1x8xf32>, vector<8x16xf32>, vector<1x16xf32> -> vector<1x16xf32>
    %c8 = arith.constant 8 : index
    %c0_13 = arith.constant 0 : index
    %18 = vector.load %arg1[%c8, %c0_13] : memref<56x128xf32, #tpu.memory_space<vmem>>, vector<3x16xf32>
    %cst_14 = arith.constant dense<0.000000e+00> : vector<1x3xf32>
    %19 = tpu.matmul %17, %18, %cst_14 {dimension_numbers = #tpu.dot_dimension_numbers<[1], [1], [0], [0], [0, 0, 1, 0], [], []>} : vector<1x16xf32>, vector<3x16xf32>, vector<1x3xf32> -> vector<1x3xf32>
    %c4 = arith.constant 4 : index
    %c0_15 = arith.constant 0 : index
    %20 = vector.load %arg1[%c4, %c0_15] : memref<56x128xf32, #tpu.memory_space<vmem>>, vector<1x3xf32>
    %21 = arith.addf %19, %20 : vector<1x3xf32>
    %cst_16 = arith.constant dense<0.000000e+00> : vector<8x4xf32>
    %22 = tpu.matmul %2, %3, %cst_16 {dimension_numbers = #tpu.dot_dimension_numbers<[1], [0], [0], [1], [0, 0, 1, 1], [], []>} : vector<8x8xf32>, vector<8x4xf32>, vector<8x4xf32> -> vector<8x4xf32>
    %c12 = arith.constant 12 : index
    %c0_17 = arith.constant 0 : index
    %23 = vector.load %arg1[%c12, %c0_17] : memref<56x128xf32, #tpu.memory_space<vmem>>, vector<4x128xf32>
    %cst_18 = arith.constant dense<0.000000e+00> : vector<8x128xf32>
    %24 = tpu.matmul %22, %23, %cst_18 {dimension_numbers = #tpu.dot_dimension_numbers<[1], [0], [0], [1], [0, 0, 1, 1], [], []>} : vector<8x4xf32>, vector<4x128xf32>, vector<8x128xf32> -> vector<8x128xf32>
    %c16 = arith.constant 16 : index
    %c0_19 = arith.constant 0 : index
    %25 = vector.load %arg1[%c16, %c0_19] : memref<56x128xf32, #tpu.memory_space<vmem>>, vector<1x128xf32>
    %26 = vector.broadcast %25 : vector<1x128xf32> to vector<8x128xf32>
    %27 = arith.addf %24, %26 : vector<8x128xf32>
    %cst_20 = arith.constant 0.000000e+00 : f32
    %28 = vector.broadcast %cst_20 : f32 to vector<8x128xf32>
    %29 = arith.maximumf %27, %28 : vector<8x128xf32>
    %c17 = arith.constant 17 : index
    %c0_21 = arith.constant 0 : index
    %30 = vector.load %arg1[%c17, %c0_21] : memref<56x128xf32, #tpu.memory_space<vmem>>, vector<3x64xf32>
    %cst_22 = arith.constant dense<0.000000e+00> : vector<1x64xf32>
    %31 = tpu.matmul %21, %30, %cst_22 {dimension_numbers = #tpu.dot_dimension_numbers<[1], [0], [0], [1], [0, 0, 1, 1], [], []>} : vector<1x3xf32>, vector<3x64xf32>, vector<1x64xf32> -> vector<1x64xf32>
    %c20 = arith.constant 20 : index
    %c0_23 = arith.constant 0 : index
    %32 = vector.load %arg1[%c20, %c0_23] : memref<56x128xf32, #tpu.memory_space<vmem>>, vector<1x64xf32>
    %33 = vector.broadcast %4 : vector<1x1xf32> to vector<1x64xf32>
    %34 = arith.mulf %33, %32 : vector<1x64xf32>
    %35 = arith.addf %31, %34 : vector<1x64xf32>
    %c21 = arith.constant 21 : index
    %c0_24 = arith.constant 0 : index
    %36 = vector.load %arg1[%c21, %c0_24] : memref<56x128xf32, #tpu.memory_space<vmem>>, vector<1x64xf32>
    %37 = arith.addf %35, %36 : vector<1x64xf32>
    %c24 = arith.constant 24 : index
    %c0_25 = arith.constant 0 : index
    %38 = vector.load %arg1[%c24, %c0_25] : memref<56x128xf32, #tpu.memory_space<vmem>>, vector<32x128xf32>
    %39 = vector.extract_strided_slice %37 {offsets = [0, 0], sizes = [1, 32], strides = [1, 1]} : vector<1x64xf32> to vector<1x32xf32>
    %40 = vector.extract_strided_slice %38 {offsets = [0, 0], sizes = [32, 64], strides = [1, 1]} : vector<32x128xf32> to vector<32x64xf32>
    %cst_26 = arith.constant dense<0.000000e+00> : vector<1x64xf32>
    %41 = tpu.matmul %39, %40, %cst_26 {dimension_numbers = #tpu.dot_dimension_numbers<[1], [0], [0], [1], [0, 0, 1, 1], [], []>} : vector<1x32xf32>, vector<32x64xf32>, vector<1x64xf32> -> vector<1x64xf32>
    %42 = vector.extract_strided_slice %37 {offsets = [0, 32], sizes = [1, 32], strides = [1, 1]} : vector<1x64xf32> to vector<1x32xf32>
    %43 = vector.extract_strided_slice %38 {offsets = [0, 64], sizes = [32, 64], strides = [1, 1]} : vector<32x128xf32> to vector<32x64xf32>
    %cst_27 = arith.constant dense<0.000000e+00> : vector<1x64xf32>
    %44 = tpu.matmul %42, %43, %cst_27 {dimension_numbers = #tpu.dot_dimension_numbers<[1], [0], [0], [1], [0, 0, 1, 1], [], []>} : vector<1x32xf32>, vector<32x64xf32>, vector<1x64xf32> -> vector<1x64xf32>
    %c11 = arith.constant 11 : index
    %c0_28 = arith.constant 0 : index
    %45 = vector.load %arg1[%c11, %c0_28] : memref<56x128xf32, #tpu.memory_space<vmem>>, vector<1x64xf32>
    %46 = vector.extract_strided_slice %37 {offsets = [0, 0], sizes = [1, 32], strides = [1, 1]} : vector<1x64xf32> to vector<1x32xf32>
    %47 = vector.extract_strided_slice %45 {offsets = [0, 0], sizes = [1, 32], strides = [1, 1]} : vector<1x64xf32> to vector<1x32xf32>
    %48 = arith.mulf %46, %47 : vector<1x32xf32>
    %cst_29 = arith.constant dense<0.000000e+00> : vector<1xf32>
    %49 = vector.multi_reduction <add>, %48, %cst_29 [1] : vector<1x32xf32> to vector<1xf32>
    %50 = vector.shape_cast %49 : vector<1xf32> to vector<1x1xf32>
    %51 = vector.extract_strided_slice %37 {offsets = [0, 32], sizes = [1, 32], strides = [1, 1]} : vector<1x64xf32> to vector<1x32xf32>
    %52 = vector.extract_strided_slice %45 {offsets = [0, 32], sizes = [1, 32], strides = [1, 1]} : vector<1x64xf32> to vector<1x32xf32>
    %53 = arith.mulf %51, %52 : vector<1x32xf32>
    %cst_30 = arith.constant dense<0.000000e+00> : vector<1xf32>
    %54 = vector.multi_reduction <add>, %53, %cst_30 [1] : vector<1x32xf32> to vector<1xf32>
    %55 = vector.shape_cast %54 : vector<1xf32> to vector<1x1xf32>
    %56 = vector.extract_strided_slice %29 {offsets = [0, 0], sizes = [8, 64], strides = [1, 1]} : vector<8x128xf32> to vector<8x64xf32>
    %cst_31 = arith.constant dense<0.000000e+00> : vector<1x8xf32>
    %57 = tpu.matmul %41, %56, %cst_31 {dimension_numbers = #tpu.dot_dimension_numbers<[1], [1], [0], [0], [0, 0, 1, 0], [], []>} : vector<1x64xf32>, vector<8x64xf32>, vector<1x8xf32> -> vector<1x8xf32>
    %58 = vector.broadcast %50 : vector<1x1xf32> to vector<1x8xf32>
    %59 = arith.addf %57, %58 : vector<1x8xf32>
    %cst_32 = arith.constant 0.176776692 : f32
    %60 = vector.broadcast %cst_32 : f32 to vector<1x8xf32>
    %61 = arith.mulf %59, %60 : vector<1x8xf32>
    %62 = vector.extract_strided_slice %29 {offsets = [0, 64], sizes = [8, 64], strides = [1, 1]} : vector<8x128xf32> to vector<8x64xf32>
    %cst_33 = arith.constant dense<0.000000e+00> : vector<1x8xf32>
    %63 = tpu.matmul %44, %62, %cst_33 {dimension_numbers = #tpu.dot_dimension_numbers<[1], [1], [0], [0], [0, 0, 1, 0], [], []>} : vector<1x64xf32>, vector<8x64xf32>, vector<1x8xf32> -> vector<1x8xf32>
    %64 = vector.broadcast %55 : vector<1x1xf32> to vector<1x8xf32>
    %65 = arith.addf %63, %64 : vector<1x8xf32>
    %cst_34 = arith.constant 0.176776692 : f32
    %66 = vector.broadcast %cst_34 : f32 to vector<1x8xf32>
    %67 = arith.mulf %65, %66 : vector<1x8xf32>
    %c7 = arith.constant 7 : index
    %c0_35 = arith.constant 0 : index
    %68 = vector.load %arg1[%c7, %c0_35] : memref<56x128xf32, #tpu.memory_space<vmem>>, vector<1x128xf32>
    %69 = vector.extract_strided_slice %68 {offsets = [0, 0], sizes = [1, 64], strides = [1, 1]} : vector<1x128xf32> to vector<1x64xf32>
    %70 = vector.extract_strided_slice %29 {offsets = [0, 0], sizes = [8, 64], strides = [1, 1]} : vector<8x128xf32> to vector<8x64xf32>
    %cst_36 = arith.constant dense<0.000000e+00> : vector<1x8xf32>
    %71 = tpu.matmul %69, %70, %cst_36 {dimension_numbers = #tpu.dot_dimension_numbers<[1], [1], [0], [0], [0, 0, 1, 0], [], []>} : vector<1x64xf32>, vector<8x64xf32>, vector<1x8xf32> -> vector<1x8xf32>
    %72 = vector.extract_strided_slice %68 {offsets = [0, 64], sizes = [1, 64], strides = [1, 1]} : vector<1x128xf32> to vector<1x64xf32>
    %73 = vector.extract_strided_slice %29 {offsets = [0, 64], sizes = [8, 64], strides = [1, 1]} : vector<8x128xf32> to vector<8x64xf32>
    %cst_37 = arith.constant dense<0.000000e+00> : vector<1x8xf32>
    %74 = tpu.matmul %72, %73, %cst_37 {dimension_numbers = #tpu.dot_dimension_numbers<[1], [1], [0], [0], [0, 0, 1, 0], [], []>} : vector<1x64xf32>, vector<8x64xf32>, vector<1x8xf32> -> vector<1x8xf32>
    %cst_38 = arith.constant dense<0xFF800000> : vector<1xf32>
    %75 = vector.multi_reduction <maximumf>, %61, %cst_38 [1] : vector<1x8xf32> to vector<1xf32>
    %76 = vector.shape_cast %75 : vector<1xf32> to vector<1x1xf32>
    %77 = vector.broadcast %76 : vector<1x1xf32> to vector<1x8xf32>
    %78 = arith.subf %61, %77 : vector<1x8xf32>
    %79 = math.exp %78 : vector<1x8xf32>
    %cst_39 = arith.constant dense<0.000000e+00> : vector<1xf32>
    %80 = vector.multi_reduction <add>, %79, %cst_39 [1] : vector<1x8xf32> to vector<1xf32>
    %81 = vector.shape_cast %80 : vector<1xf32> to vector<1x1xf32>
    %82 = tpu.reciprocal %81 {approx = true} : vector<1x1xf32> -> vector<1x1xf32>
    %83 = vector.broadcast %82 : vector<1x1xf32> to vector<1x8xf32>
    %84 = arith.mulf %79, %83 : vector<1x8xf32>
    %cst_40 = arith.constant dense<0xFF800000> : vector<1xf32>
    %85 = vector.multi_reduction <maximumf>, %67, %cst_40 [1] : vector<1x8xf32> to vector<1xf32>
    %86 = vector.shape_cast %85 : vector<1xf32> to vector<1x1xf32>
    %87 = vector.broadcast %86 : vector<1x1xf32> to vector<1x8xf32>
    %88 = arith.subf %67, %87 : vector<1x8xf32>
    %89 = math.exp %88 : vector<1x8xf32>
    %cst_41 = arith.constant dense<0.000000e+00> : vector<1xf32>
    %90 = vector.multi_reduction <add>, %89, %cst_41 [1] : vector<1x8xf32> to vector<1xf32>
    %91 = vector.shape_cast %90 : vector<1xf32> to vector<1x1xf32>
    %92 = tpu.reciprocal %91 {approx = true} : vector<1x1xf32> -> vector<1x1xf32>
    %93 = vector.broadcast %92 : vector<1x1xf32> to vector<1x8xf32>
    %94 = arith.mulf %89, %93 : vector<1x8xf32>
    %c5 = arith.constant 5 : index
    %c0_42 = arith.constant 0 : index
    %95 = vector.load %arg1[%c5, %c0_42] : memref<56x128xf32, #tpu.memory_space<vmem>>, vector<1x2xf32>
    %96 = vector.extract_strided_slice %37 {offsets = [0, 0], sizes = [1, 32], strides = [1, 1]} : vector<1x64xf32> to vector<1x32xf32>
    %c6 = arith.constant 6 : index
    %c0_43 = arith.constant 0 : index
    %97 = vector.load %arg1[%c6, %c0_43] : memref<56x128xf32, #tpu.memory_space<vmem>>, vector<1x32xf32>
    %98 = arith.mulf %96, %97 : vector<1x32xf32>
    %cst_44 = arith.constant dense<0.000000e+00> : vector<1xf32>
    %99 = vector.multi_reduction <add>, %98, %cst_44 [1] : vector<1x32xf32> to vector<1xf32>
    %100 = vector.shape_cast %99 : vector<1xf32> to vector<1x1xf32>
    %101 = vector.extract_strided_slice %95 {offsets = [0, 0], sizes = [1, 1], strides = [1, 1]} : vector<1x2xf32> to vector<1x1xf32>
    %102 = arith.addf %100, %101 : vector<1x1xf32>
    %103 = arith.mulf %84, %71 : vector<1x8xf32>
    %104 = vector.broadcast %102 : vector<1x1xf32> to vector<1x8xf32>
    %105 = arith.addf %103, %104 : vector<1x8xf32>
    %cst_45 = arith.constant dense<0xFF800000> : vector<1xf32>
    %106 = vector.multi_reduction <maximumf>, %105, %cst_45 [1] : vector<1x8xf32> to vector<1xf32>
    %107 = vector.shape_cast %106 : vector<1xf32> to vector<1x1xf32>
    %108 = vector.broadcast %107 : vector<1x1xf32> to vector<1x8xf32>
    %109 = arith.subf %105, %108 : vector<1x8xf32>
    %110 = math.exp %109 : vector<1x8xf32>
    %cst_46 = arith.constant dense<0.000000e+00> : vector<1xf32>
    %111 = vector.multi_reduction <add>, %110, %cst_46 [1] : vector<1x8xf32> to vector<1xf32>
    %112 = vector.shape_cast %111 : vector<1xf32> to vector<1x1xf32>
    %113 = vector.broadcast %112 : vector<1x1xf32> to vector<1x8xf32>
    %114 = arith.divf %110, %113 : vector<1x8xf32>
    %115 = math.log %112 : vector<1x1xf32>
    %116 = arith.addf %107, %115 : vector<1x1xf32>
    %117 = arith.mulf %94, %74 : vector<1x8xf32>
    %cst_47 = arith.constant dense<0.000000e+00> : vector<1xf32>
    %118 = vector.multi_reduction <add>, %117, %cst_47 [1] : vector<1x8xf32> to vector<1xf32>
    %119 = vector.shape_cast %118 : vector<1xf32> to vector<1x1xf32>
    %120 = vector.extract_strided_slice %95 {offsets = [0, 1], sizes = [1, 1], strides = [1, 1]} : vector<1x2xf32> to vector<1x1xf32>
    %121 = arith.addf %119, %120 : vector<1x1xf32>
    %cst_48 = arith.constant 0.000000e+00 : f32
    %122 = vector.broadcast %cst_48 : f32 to vector<1x128xf32>
    %c0_49 = arith.constant 0 : index
    %c0_50 = arith.constant 0 : index
    %123 = vector.load %arg2[%c0_49, %c0_50] : memref<1x128xf32, #tpu.memory_space<vmem>>, vector<1x128xf32>
    tpu.vector_store %arg2[%c0_49, %c0_50], %122 {strides = array<i32>} : memref<1x128xf32, #tpu.memory_space<vmem>>, vector<1x128xf32>,
    %c0_51 = arith.constant 0 : index
    %c0_52 = arith.constant 0 : index
    %124 = vector.load %arg2[%c0_51, %c0_52] : memref<1x128xf32, #tpu.memory_space<vmem>>, vector<1x8xf32>
    tpu.vector_store %arg2[%c0_51, %c0_52], %114 {strides = array<i32>} : memref<1x128xf32, #tpu.memory_space<vmem>>, vector<1x8xf32>,
    %c0_53 = arith.constant 0 : index
    %c32_54 = arith.constant 32 : index
    %125 = vector.load %arg2[%c0_53, %c32_54] : memref<1x128xf32, #tpu.memory_space<vmem>>, vector<1x8xf32>
    tpu.vector_store %arg2[%c0_53, %c32_54], %105 {strides = array<i32>} : memref<1x128xf32, #tpu.memory_space<vmem>>, vector<1x8xf32>,
    %c0_55 = arith.constant 0 : index
    %c64_56 = arith.constant 64 : index
    %126 = vector.load %arg2[%c0_55, %c64_56] : memref<1x128xf32, #tpu.memory_space<vmem>>, vector<1x1xf32>
    tpu.vector_store %arg2[%c0_55, %c64_56], %121 {strides = array<i32>} : memref<1x128xf32, #tpu.memory_space<vmem>>, vector<1x1xf32>,
    %c0_57 = arith.constant 0 : index
    %c65 = arith.constant 65 : index
    %127 = vector.load %arg2[%c0_57, %c65] : memref<1x128xf32, #tpu.memory_space<vmem>>, vector<1x1xf32>
    tpu.vector_store %arg2[%c0_57, %c65], %116 {strides = array<i32>} : memref<1x128xf32, #tpu.memory_space<vmem>>, vector<1x1xf32>,
    return
  }
}

</mosaic_0001>

<bundles_post_ra>
// kernel: tpu_custom_call.1
= control target key start
LH: loop header
LB: loop body
LE: loop exit
PB: predicated region body
PF: predicated region fallthrough
CT: control target
= control target key end

     0   :  { %7 = vsyncpa [#allocation3], 0  ;;  %s762_s0 = inlined_call_operand.hbm [shape: f32[8,128], index: 0, kind: input, shape index: {}]   ;;  %s763_s1 = inlined_call_operand.hbm [shape: f32[56,128], index: 1, kind: input, shape index: {}]   ;;  %s764_s2 = inlined_call_operand.hbm [shape: f32[1,128], index: 2, kind: output, shape index: {}]  }
   0x1   :  { %8 = vsyncpa [#allocation6], 0 }
   0x2   :  { %9 = vsyncpa [#allocation4], 0  ;;  %s15_s11 = sshll.u32 %s762_s0, 4  ;;  %s685_s12 = smov [#allocation2]   ;;  %s16_s11 = int_to_ptr.hbm [resolvable:$true] %s15_s11 }
   0x3   :  { %s17_s13 = sshll.u32 %s685_s12, 4  ;;  %s25_s16 = sshll.u32 %s763_s1, 4  ;;  %s18_s13 = int_to_ptr.vmem [resolvable:$true] %s17_s13  ;;  %s26_s16 = int_to_ptr.hbm [resolvable:$true] %s25_s16 }
   0x4   :  { %20 = dma.hbm_to_vmem [thread:$0]  %s16_s11, 128, %s18_s13, [#allocation3]  }
   0x5   :  { %s686_s17 = smov [#allocation5]   ;;  %s687_s19 = smov 128  }
   0x6   :  { %s27_s18 = sshll.u32 %s686_s17, 4  ;;  %s688_s20 = smov 8   ;;  %s28_s18 = int_to_ptr.vmem [resolvable:$true] %s27_s18 }
   0x7   :  { %33 = dma.hbm_to_vmem [thread:$0]  %s26_s16, 896, %s28_s18, [#allocation6], %s687_s19, %s687_s19, %s688_s20  }
   0x8   :  { %679 = dma.done.wait [#allocation3], 128  }
   0x9   :  { %680 = vsyncadd [#allocation3], 4294967168 }
   0xa   :  { %681 = dma.done.wait [#allocation6], 896  }
   0xb   :  { %682 = vsyncadd [#allocation6], 4294966400  ;;  %v42_v0 = vld [vmem:[#allocation2] sm:$0xff]  ;;  %s689_s0 = smov 96   ;;  %vm48_vm0 = vcmask 64512   ;;  %vm78_vm1 = vcmask 1042432  }
   0xc   :  { %45 = vrot.lane.b32.xlu0 %v42_v0, %s689_s0  ;;  %v71_v2 = vld [vmem:[#allocation5] sm:$0x7]  ;;  %vm74_vm2 = vcmask 23552   ;;  %v134_v4 = vld [vmem:[#allocation5 + $0x8] sm:$0x7]  ;;  %vm136_vm3 = vcmask 130048  }
   0xd   :  { %547 = vmatpush.msk.msra.mxu1 %vm78_vm1, %v71_v2  ;;  %v103_v5 = vsel %vm48_vm0, %v42_v0, 0.0  ;;  %550 = vmatpush.xpose.msk.msra.mxu3 %vm136_vm3, %v134_v4  ;;  %v591_v11 = vld [vmem:[#allocation5 + $0x3] ss:$0 sm:$0xff]  ;;  %s690_s1 = smov 32   ;;  %s691_s21 = smov 64   ;;  %vm197_vm4 = vcmask 1043456  }
   0xe   :  { %v104_v6 = vrot.slane %v103_v5, 4  ;;  %163 = vrot.lane.b32.xlu1 %v42_v0, %s691_s21  ;;  %v222_v17 = vld [vmem:[#allocation5 + $0x11] sm:$0x7]  ;;  %v43_v21 = vld [vmem:[#allocation2] sm:$0x1]  ;;  %v692_v23 = vmov 120  }
   0xf   :  { %v190_v22 = vld [vmem:[#allocation5 + $0xc] sm:$0xf]  ;;  %579 = vset.pattern.permute.xlu1 %v692_v23  ;;  %v261_v25 = vld [vmem:[#allocation5 + $0x30] sm:$0xff]  ;;  %vm193_vm5 = vcmask 31744   ;;  %v135_v28 = vld [vmem:[#allocation5 + $0x4] sm:$0x1] }
  0x10   :  { %v105_v7 = vadd.f32 %v104_v6, %v103_v5  ;;  %553 = vmatpush.msk.msrb.mxu1 %vm197_vm4, %v190_v22  ;;  %v260_v24 = vld [vmem:[#allocation5 + $0x28] sm:$0xff]  ;;  %v258_v31 = vld [vmem:[#allocation5 + $0x18] sm:$0xff]  ;;  %v259_v32 = vld [vmem:[#allocation5 + $0x20] sm:$0xff]  ;;  %vm262_vm6 = vcmask 261120   ;;  %vm328_vm7 = vcmask 253952   ;;  %vm339_vm8 = vcmask 523264  }
  0x11   :  { %v580_v26 = vpack.i.bf16 %v260_v24, %v261_v25  ;;  %278 = vmatpush.msrb.mxu3 %v261_v25  ;;  %v585_v33 = vpack.i.bf16 %v258_v31, %v259_v32  ;;  %v223_v34 = vld [vmem:[#allocation5 + $0x14] sm:$0x1]  ;;  %v256_v38 = vld [vmem:[#allocation5 + $0x15] sm:$0x1]  ;;  %v326_v40 = vld [vmem:[#allocation5 + $0xb] sm:$0x1] }
  0x12   :  { %v106_v8 = vrot.slane %v105_v7, 2  ;;  %v592_v50 = vld [vmem:[#allocation5 + $0x10] ss:$0 sm:$0xff]  ;;  %v467_v56 = vld [vmem:[#allocation5 + $0x6] sm:$0x1]  ;;  %vm443_vm9 = vcmask 57344  }
  0x13   :  { %581 = vrot.lane.b32.xlu2 %v580_v26, %s691_s21  ;;  %279 = vmatpush.msrb.mxu3 %v260_v24  ;;  %v395_v61 = vld [vmem:[#allocation5 + $0x7] sm:$0x1]  ;;  %v693_v6 = vmov 0   ;;  %s695_s22 = smov 63   ;;  %vm518_vm14 = vcmask 319744   ;;  %s696_s23 = smov [#allocation7]  }
  0x14   :  { %v107_v9 = vadd.f32 %v106_v8, %v105_v7  ;;  %165 = vrot.lane.b32.xlu0 %v42_v0, %s690_s1  ;;  %s533_s24 = sshll.u32 %s696_s23, 4  ;;  %s535_s27 = sshll.u32 %s764_s2, 4  ;;  %vm524_vm15 = vcmask 524800   ;;  %s534_s24 = int_to_ptr.vmem [resolvable:$true] %s533_s24  ;;  %s536_s27 = int_to_ptr.hbm [resolvable:$true] %s535_s27 }
  0x15   :  { %280 = vmatpush.msrb.mxu3 %v259_v32  ;;  %590 = vset.pattern.permute.xlu0 %v693_v6 }
  0x16   :  { %v108_v10 = vrot.slane %v107_v9, 1  ;;  %226 = vperm.xlu1 %579, %v43_v21  }
  0x17   :  { %281 = vmatpush.msrb.mxu3 %v258_v31 }
  0x18   :  { %v109_v12 = vadd.f32 %v108_v10, %v107_v9 }
  0x1a   :  { %v110_v15 = vmul.f32 0.125, %v109_v12 }
  0x1b   :  { %586 = vrot.lane.b32.xlu2 %v585_v33, %s691_s21 }
  0x6d   :  { %v582_v43 = vpop.permute.xlu2 %581 }
  0x6e   :  { %v584_v44 = vunpack.i.h.bf16 %v582_v43  ;;  %v583_v45 = vunpack.i.l.bf16 %v582_v43 }
  0x75   :  { %v587_v46 = vpop.permute.xlu2 %586 }
  0x76   :  { %v589_v47 = vunpack.i.h.bf16 %v587_v46  ;;  %v588_v48 = vunpack.i.l.bf16 %v587_v46  ;;  %v694_v46 = vmov 0.0  }
  0x77   :  { %512 = vst [vmem:[#allocation7] sm:$0x1] %v694_v46 }
  0x7e   :  { %v46_v1 = vpop.permute.xlu0 %45 }
  0x7f   :  { %66 = vmatpush.msra.mxu0 %v46_v1 }
  0x80   :  { %546 = vmatmul.msk.f32.vlgmr.msra.gmra.mxu0 %vm48_vm0, %v42_v0  ;;  %v164_v19 = vpop.permute.xlu1 %163 }
  0x86   :  { %v166_v18 = vpop.permute.xlu0 %165 }
  0x87   :  { %185 = vmatpush.msrb.mxu0 %v166_v18 }
  0x88   :  { %552 = vmatmul.msk.f32.vlgmr.msrb.gmra.mxu0 %vm48_vm0, %v164_v19  ;;  %v227_v35 = vpop.permute.xlu1 %226 }
  0x89   :  { %v229_v36 = vmul.f32 %v227_v35, %v223_v34  ;;  %318 = vmatpush.msra.mxu0 %v583_v45 }
  0x8b   :  { %319 = vmatpush.msra.mxu0 %v584_v44 }
  0x8d   :  { %320 = vmatpush.msra.mxu0 %v588_v48 }
  0x8f   :  { %321 = vmatpush.msra.mxu0 %v589_v47 }
  0xfd   :  { %v68_v3 = vpop.f32.mrf.mxu0 }
  0xfe   :  { %548 = vmatmul.msk.f32.vlgmr.msra.gmra.mxu1 %vm74_vm2, %v68_v3 }
 0x105   :  { %v187_v27 = vpop.f32.mrf.mxu0 }
 0x106   :  { %554 = vmatmul.msk.f32.vlgmr.msrb.gmra.mxu1 %vm193_vm5, %v187_v27 }
 0x17b   :  { %v99_v13 = vpop.f32.mrf.mxu1 }
 0x17c   :  { %v100_v14 = vadd.f32 %v591_v11, %v99_v13 }
 0x17e   :  { %v102_v16 = vmax.f32 %v100_v14, 0.0 }
 0x180   :  { %129 = vmatpush.msra.mxu2 %v102_v16 }
 0x181   :  { %549 = vmatmul.msk.f32.vlgmr.msra.gmra.mxu2 %vm48_vm0, %v110_v15  ;;  %vm526_vm0 = vcmask 533000  }
 0x182   :  { %555 = vmatpush.msk.msrb.mxu2 %vm78_vm1, %v222_v17  ;;  %v466_v17 = vld [vmem:[#allocation5 + $0x5] sm:$0x1] }
 0x183   :  { %v218_v51 = vpop.f32.mrf.mxu1 }
 0x184   :  { %v219_v52 = vadd.f32 %v592_v50, %v218_v51 }
 0x186   :  { %v221_v53 = vmax.f32 %v219_v52, 0.0 }
 0x188   :  { %367 = vrot.lane.b32.xlu1 %v221_v53, %s691_s21  ;;  %559 = vmatpush.xpose.msk.msra.mxu1 %vm339_vm8, %v221_v53 }
 0x190   :  { %419 = vrot.lane.b32.xlu1 %v395_v61, %s691_s21 }
 0x1fa   :  { %v368_v62 = vpop.permute.xlu1 %367 }
 0x1fb   :  { %561 = vmatpush.xpose.msk.msra.mxu2 %vm339_vm8, %v368_v62  ;;  %565 = vmatpush.xpose.msk.msrb.mxu0 %vm339_vm8, %v368_v62 }
 0x202   :  { %v420_v5 = vpop.permute.xlu1 %419 }
 0x204   :  { %v131_v20 = vpop.f32.mrf.mxu2 }
 0x205   :  { %551 = vmatmul.msk.f32.vlgmr.msra.gmra.mxu3 %vm136_vm3, %v131_v20 }
 0x206   :  { %563 = vmatpush.xpose.msk.msra.mxu3 %vm339_vm8, %v221_v53 }
 0x288   :  { %v160_v29 = vpop.f32.mrf.mxu3 }
 0x289   :  { %v161_v30 = vadd.f32 %v160_v29, %v135_v28 }
 0x28b   :  { %556 = vmatmul.msk.f32.vlgmr.msrb.gmra.mxu2 %vm74_vm2, %v161_v30 }
 0x30e   :  { %v253_v37 = vpop.f32.mrf.mxu2 }
 0x30f   :  { %v254_v39 = vadd.f32 %v253_v37, %v229_v36 }
 0x311   :  { %v257_v41 = vadd.f32 %v256_v38, %v254_v39 }
 0x313   :  { %286 = vrot.lane.b32.xlu0 %v257_v41, %s689_s0  ;;  %557 = vmatmul.msk.f32.vlgmr.msrb.gmra.mxu3 %vm262_vm6, %v257_v41  ;;  %v327_v42 = vmul.f32 %v326_v40, %v257_v41  ;;  %v468_v57 = vmul.f32 %v467_v56, %v257_v41 }
 0x315   :  { %333 = vrot.lane.b32.xlu2 %v327_v42, %s689_s0  ;;  %v329_v49 = vsel %vm328_vm7, %v327_v42, 0.0  ;;  %v469_v58 = vsel %vm328_vm7, %v468_v57, 0.0 }
 0x31b   :  { %564 = vmatmul.msk.f32.vlgmr.msra.gmra.mxu3 %vm339_vm8, %v395_v61 }
 0x33d   :  { %330 = vadd.xlane.f32.xlu0 %v329_v49 }
 0x36f   :  { %v334_v54 = vpop.permute.xlu2 %333 }
 0x370   :  { %v336_v55 = vsel %vm328_vm7, %v334_v54, 0.0 }
 0x371   :  { %337 = vadd.xlane.f32.xlu2 %v336_v55 }
 0x379   :  { %470 = vadd.xlane.f32.xlu2 %v469_v58 }
 0x385   :  { %v287_v59 = vpop.permute.xlu0 %286 }
 0x386   :  { %558 = vmatmul.msk.f32.vlgmr.msra.gmra.mxu0 %vm262_vm6, %v287_v59 }
 0x38e   :  { %566 = vmatmul.msk.f32.vlgmr.msrb.gmra.mxu0 %vm339_vm8, %v420_v5 }
 0x396   :  { %v283_v60 = vpop.f32.mrf.mxu3 }
 0x397   :  { %560 = vmatmul.msk.f32.vlgmr.msra.gmra.mxu1 %vm339_vm8, %v283_v60 }
 0x39e   :  { %v416_v27 = vpop.f32.mrf.mxu3 }
 0x3b0   :  { %v331_v0 = vpop.xlane.xlu0 %330 }
 0x3e4   :  { %v338_v7 = vpop.xlane.xlu2 %337 }
 0x3ec   :  { %v471_v18 = vpop.xlane.xlu2 %470 }
 0x3ed   :  { %v472_v19 = vadd.f32 %v471_v18, %v466_v17 }
 0x403   :  { %v323_v63 = vpop.f32.mrf.mxu0 }
 0x404   :  { %562 = vmatmul.msk.f32.vlgmr.msra.gmra.mxu2 %vm339_vm8, %v323_v63 }
 0x40b   :  { %v440_v36 = vpop.f32.mrf.mxu0 }
 0x414   :  { %v363_v1 = vpop.f32.mrf.mxu1 }
 0x415   :  { %v364_v2 = vadd.f32 %v363_v1, %v331_v0 }
 0x417   :  { %v366_v3 = vmul.f32 0.17677669, %v364_v2 }
 0x419   :  { %v444_v4 = vsel %vm443_vm9, %v366_v3, -inf }
 0x41a   :  { %445 = vmax.xlane.f32.xlu1 %v444_v4 }
 0x487   :  { %v391_v8 = vpop.f32.mrf.mxu2 }
 0x488   :  { %v392_v9 = vadd.f32 %v391_v8, %v338_v7 }
 0x48a   :  { %v394_v10 = vmul.f32 0.17677669, %v392_v9 }
 0x48c   :  { %v455_v11 = vsel %vm443_vm9, %v394_v10, -inf }
 0x48d   :  { %456 = vmax.xlane.f32.xlu0 %v455_v11  ;;  %v446_v12 = vpop.xlane.xlu1 %445 }
 0x48e   :  { %v447_v13 = vsub.f32 %v366_v3, %v446_v12 }
 0x490   :  { %v448_v14 = vmul.f32 1.442695, %v447_v13 }
 0x492   :  { %593 = vpow2.f32 %v448_v14 }
 0x498   :  { %v594_v15 = vpop.eup %593 }
 0x499   :  { %v450_v16 = vsel %vm443_vm9, %v594_v15, 0.0 }
 0x49a   :  { %451 = vadd.xlane.f32.xlu2 %v450_v16 }
 0x4a1   :  { %476 = vperm.xlu0 %590, %v472_v19  }
 0x500   :  { %v457_v20 = vpop.xlane.xlu0 %456 }
 0x501   :  { %v458_v21 = vsub.f32 %v394_v10, %v457_v20 }
 0x503   :  { %v459_v22 = vmul.f32 1.442695, %v458_v21 }
 0x505   :  { %595 = vpow2.f32 %v459_v22 }
 0x50b   :  { %v596_v23 = vpop.eup %595 }
 0x50c   :  { %v461_v24 = vsel %vm443_vm9, %v596_v23, 0.0 }
 0x50d   :  { %462 = vadd.xlane.f32.xlu1 %v461_v24  ;;  %v452_v25 = vpop.xlane.xlu2 %451 }
 0x50e   :  { %597 = vrcp.f32 %v452_v25 }
 0x513   :  { %v477_v30 = vpop.permute.xlu0 %476 }
 0x514   :  { %v598_v26 = vpop.eup %597 }
 0x515   :  { %v454_v28 = vmul.f32 %v598_v26, %v594_v15 }
 0x517   :  { %v473_v29 = vmul.f32 %v454_v28, %v416_v27 }
 0x519   :  { %v479_v31 = vadd.f32 %v477_v30, %v473_v29 }
 0x51b   :  { %v480_v32 = vsel %vm443_vm9, %v479_v31, -inf }
 0x51c   :  { %481 = vmax.xlane.f32.xlu2 %v480_v32 }
 0x580   :  { %v463_v33 = vpop.xlane.xlu1 %462 }
 0x581   :  { %599 = vrcp.f32 %v463_v33 }
 0x587   :  { %v600_v34 = vpop.eup %599 }
 0x588   :  { %v465_v35 = vmul.f32 %v600_v34, %v596_v23 }
 0x58a   :  { %v507_v37 = vmul.f32 %v465_v35, %v440_v36 }
 0x58c   :  { %v508_v38 = vsel %vm443_vm9, %v507_v37, 0.0 }
 0x58d   :  { %509 = vadd.xlane.f32.xlu1 %v508_v38 }
 0x58f   :  { %v482_v39 = vpop.xlane.xlu2 %481 }
 0x590   :  { %v483_v40 = vsub.f32 %v479_v31, %v482_v39 }
 0x592   :  { %v484_v41 = vmul.f32 1.442695, %v483_v40 }
 0x594   :  { %601 = vpow2.f32 %v484_v41 }
 0x59a   :  { %v602_v42 = vpop.eup %601 }
 0x59b   :  { %v486_v43 = vsel %vm443_vm9, %v602_v42, 0.0 }
 0x59c   :  { %487 = vadd.xlane.f32.xlu2 %v486_v43 }
 0x5a6   :  { %515 = vrot.lane.b32.xlu1 %v479_v31, %s690_s1 }
 0x600   :  { %v510_v44 = vpop.xlane.xlu1 %509 }
 0x601   :  { %v511_v45 = vadd.f32 %v510_v44, %v466_v17 }
 0x603   :  { %521 = vrot.lane.b32.xlu2 %v511_v45, %s695_s22 }
 0x60f   :  { %v488_v47 = vpop.xlane.xlu2 %487 }
 0x610   :  { %603 = vrcp.f32 %v488_v47  ;;  %v500_v51 = vand.u32 2147483648, %v488_v47  ;;  %v498_v53 = vand.u32 2147483647, %v488_v47  ;;  %vm494_vm11 = vweird.f32 %v488_v47 }
 0x611   :  { %605 = vlog2.f32 %v488_v47 }
 0x612   :  { %v501_v55 = vor.u32 1.1754944e-38, %v500_v51  ;;  %vm499_vm13 = vcmp.eq.f32.partialorder %v498_v53, 8.507059e+37 }
 0x616   :  { %v604_v48 = vpop.eup %603 }
 0x617   :  { %v490_v49 = vmul.f32 %v604_v48, %v488_v47  ;;  %vm495_vm10 = vweird.f32 %v604_v48  ;;  %v606_v60 = vpop.eup %605 }
 0x618   :  { %vm496_vm12 = vmor %vm494_vm11, %vm495_vm10  ;;  %v516_v59 = vpop.permute.xlu1 %515  ;;  %v505_v61 = vmul.f32 0.6931472, %v606_v60 }
 0x619   :  { %v491_v50 = vsub.f32 1.0, %v490_v49 }
 0x61a   :  { %v506_v63 = vadd.f32 %v505_v61, %v482_v39 }
 0x61b   :  { %v492_v52 = vmul.f32 %v604_v48, %v491_v50 }
 0x61d   :  { %v493_v54 = vadd.f32 %v604_v48, %v492_v52 }
 0x61f   :  { %v497_v56 = vsel %vm496_vm12, %v604_v48, %v493_v54 }
 0x620   :  { %v502_v57 = vsel %vm499_vm13, %v501_v55, %v497_v56 }
 0x621   :  { %v503_v58 = vmul.f32 %v602_v42, %v502_v57 }
 0x623   :  { %513 = vst.msk [vmem:[#allocation7] sm:$0x1] %vm443_vm9, %v503_v58 }
 0x624   :  { %519 = vst.msk [vmem:[#allocation7] sm:$0x1] %vm518_vm14, %v516_v59 }
 0x65d   :  { %v522_v62 = vpop.permute.xlu2 %521 }
 0x65e   :  { %525 = vst.msk [vmem:[#allocation7] sm:$0x1] %vm524_vm15, %v522_v62 }
 0x65f   :  { %527 = vst.msk [vmem:[#allocation7] sm:$0x1] %vm526_vm0, %v506_v63 }
 0x660   :  { %538 = dma.vmem_to_hbm [thread:$0]  %s534_s24, 16, %s536_s27, [#allocation4]  }
 0x661   :  { %683 = dma.done.wait [#allocation4], 16  }
 0x662   :  { %684 = vsyncadd [#allocation4], 4294967280 }
 0x663   :  { %543 = vsyncpa [#allocation3], 1 }
 0x664   :  { %544 = vsyncpa [#allocation6], 1 }
 0x665   :  { %545 = vsyncpa [#allocation4], 1 }

</bundles_post_ra>
